<compile_context>
chip_gen: v7x
topology: tpu7x:2x2x1
jax: 0.10.0
libtpu: 0.0.40
codegen_flags: <defaults>
</compile_context>

<pallas_src>
import functools

import jax
import jax.numpy as jnp
from jax import lax
from jax.experimental import pallas as pl
from jax.experimental.pallas import tpu as pltpu


def _round_up(x, m):
    return ((x + m - 1) // m) * m


def _cdiv(a, b):
    return -(-a // b)


# Sublane alignment legal for f32 (8,128), bf16 (16,128) and int8 (32,128).
_ROW_ALIGN = 32


# ----------------------------------------------------------------------------
# Pallas kernel: int8 activation levels x bf16 integer-level weights on the
# MXU (f32 accumulate), single epilogue rescale + bias, bf16 store.
# ----------------------------------------------------------------------------
def _patch_embed_kernel(s_ref, x_ref, w_ref, b_ref, o_ref):
    # s_ref: SMEM (1,)  f32  combined dequant scale = act_alpha * w_scale
    # x_ref: (tm, K)    int8 pre-quantized activation levels round(clip(x/a))
    # w_ref: (K, Npad)  bf16 integer weight levels (weight-normalized, quant)
    # b_ref: (1, Npad)  f32  bias
    # o_ref: (tm, Npad) bf16 output tokens
    #
    # Integer levels |v| <= 128 are exact in bf16 -> bf16 MXU, f32 accumulate.
    # (int8 -> f32 -> bf16 cast: both steps are standard Mosaic conversions.)
    x_bf16 = x_ref[...].astype(jnp.float32).astype(jnp.bfloat16)
    acc = jnp.dot(x_bf16, w_ref[...], preferred_element_type=jnp.float32)
    # One epilogue multiply on the (tm, Npad) accumulator + bias, bf16 store.
    o_ref[...] = (acc * s_ref[0] + b_ref[...]).astype(o_ref.dtype)


def _choose_row_tiling(M, tm):
    """Pick (tile_rows, grid_steps) for the row dimension.

    Prefers >= 2 grid steps when M allows (so the parallel grid axis can shard
    across v7x's two TensorCores; no effect on v5e/v6e), and picks the smallest
    32-aligned tile covering M in that many steps to minimize zero-padding."""
    tm = max(_ROW_ALIGN, (tm // _ROW_ALIGN) * _ROW_ALIGN)
    want_steps = max(_cdiv(M, tm), 2 if M > _ROW_ALIGN else 1)
    tm_eff = _round_up(_cdiv(M, want_steps), _ROW_ALIGN)
    steps = _cdiv(M, tm_eff)
    return tm_eff, steps


def _patch_projection(xq_int8, w_int_bf16, bias, out_scale, *, tm=1024):
    """xq_int8: (M, K) int8 activation levels; w_int_bf16: (K, N) bf16 integer
    levels; bias: (N,) f32; out_scale: scalar f32.  Returns (M, N) bf16."""
    M, K = xq_int8.shape
    N = w_int_bf16.shape[1]

    # Lane-dense output: pad embed dim to a multiple of 128 (unmasked vst).
    n_pad = _round_up(N, 128)
    if n_pad != N:
        w_int_bf16 = jnp.pad(w_int_bf16, ((0, 0), (0, n_pad - N)))
        bias = jnp.pad(bias, (0, n_pad - N))
    bias2d = bias.reshape(1, n_pad).astype(jnp.float32)

    tm_eff, steps = _choose_row_tiling(M, tm)
    m_pad = tm_eff * steps
    if m_pad != M:
        xq_int8 = jnp.pad(xq_int8, ((0, m_pad - M), (0, 0)))

    scale = jnp.reshape(out_scale.astype(jnp.float32), (1,))

    out = pl.pallas_call(
        _patch_embed_kernel,
        out_shape=jax.ShapeDtypeStruct((m_pad, n_pad), jnp.bfloat16),
        grid=(steps,),
        in_specs=[
            pl.BlockSpec(memory_space=pltpu.MemorySpace.SMEM),   # out_scale
            pl.BlockSpec((tm_eff, K), lambda i: (i, 0)),         # int8 x tile
            pl.BlockSpec((K, n_pad), lambda i: (0, 0)),          # weights (resident)
            pl.BlockSpec((1, n_pad), lambda i: (0, 0)),          # bias (resident)
        ],
        out_specs=pl.BlockSpec((tm_eff, n_pad), lambda i: (i, 0)),
        compiler_params=pltpu.CompilerParams(
            dimension_semantics=("parallel",)),
    )(scale, xq_int8, w_int_bf16, bias2d)

    if m_pad != M or n_pad != N:
        out = out[:M, :N]
    return out


# ----------------------------------------------------------------------------
# PatchEmbed forward (JAX glue around the kernel).
# ----------------------------------------------------------------------------
def patch_embed_forward(x, params, *, img_size, patch_size, nbits_act=8,
                        nbits_w=8, tm=1024):
    """x: (B, C, H, W) float32 (NCHW, like PyTorch).
    Returns (tokens: (B, num_patches, E) bfloat16, bitops)."""
    B, C, H, W = x.shape
    pH, pW = patch_size
    assert H == img_size[0] and W == img_size[1], (
        f"Input image size ({H}*{W}) doesn't match model "
        f"({img_size[0]}*{img_size[1]}).")
    nH, nW = H // pH, W // pW
    num_patches = nH * nW

    v = params["proj_v"]        # (E, C, pH, pW) weight-norm direction
    g = params["proj_g"]        # (E,)           weight-norm gain
    bias = params["proj_bias"]  # (E,)
    alpha = params["act_alpha"]  # (1,)           learned activation scale
    E = v.shape[0]

    # --- parameter prep (plain JAX glue) ---------------------------------
    # Weight normalization: w = g * v / ||v||  (per output channel), then
    # symmetric fake-quant kept as INTEGER levels (exact in bf16 for <=8 bits);
    # the combined scale alpha*w_scale goes to the kernel epilogue.
    v_flat = v.reshape(E, -1).astype(jnp.float32)                # (E, K)
    v_norm = jnp.sqrt(jnp.sum(v_flat * v_flat, axis=1, keepdims=True))
    w = (g[:, None].astype(jnp.float32) / v_norm) * v_flat       # (E, K)
    qp_w = 2.0 ** (nbits_w - 1) - 1.0
    w_scale = jnp.maximum(jnp.max(jnp.abs(w)) / qp_w, 1e-12)     # eps guard
    w_int = jnp.round(jnp.clip(w / w_scale, -qp_w - 1.0, qp_w))  # integer levels
    w_int_bf16 = w_int.T.astype(jnp.bfloat16)                    # (K, E), exact

    qp_a = 2.0 ** (nbits_act - 1) - 1.0
    qn_a = -(2.0 ** (nbits_act - 1))
    alpha0 = jnp.maximum(jnp.abs(alpha.reshape(()).astype(jnp.float32)), 1e-12)
    out_scale = alpha0 * w_scale

    # --- activation fake-quant fused into the patchify pass --------------
    #   x_q = round(clamp(x/alpha, qn, qp)) * alpha == xq_int * alpha
    # The int8 levels travel through the transpose and the kernel (1 B/elem);
    # alpha is applied once in the kernel epilogue.
    xq_int = jnp.round(
        jnp.clip(x.astype(jnp.float32) * (1.0 / alpha0), qn_a, qp_a)
    ).astype(jnp.int8)
    # order (c, ph, pw) matches the flattened conv weight layout.
    xp = xq_int.reshape(B, C, nH, pH, nW, pW)
    xp = jnp.transpose(xp, (0, 2, 4, 1, 3, 5))                   # (B,nH,nW,C,pH,pW)
    xp = xp.reshape(B * num_patches, C * pH * pW)                # (M, K) int8

    # --- hot path in Pallas ----------------------------------------------
    out = _patch_projection(xp, w_int_bf16, bias.astype(jnp.float32),
                            out_scale, tm=tm)                    # (M, E) bf16
    tokens = out.reshape(B, num_patches, E)                      # == flatten(2).T

    # bitops (bit_pass(n) == n for quantized layers)
    bitops = H * W * v.size * nbits_act * nbits_w / (pH * pW)
    return tokens, bitops


# ----------------------------------------------------------------------------
# Deterministic parameter construction (synthetic, no checkpoint).
# ----------------------------------------------------------------------------
def init_patch_embed_params(key, *, in_chans, embed_dim, patch_size):
    pH, pW = patch_size
    k1, k2, k3 = jax.random.split(key, 3)
    fan_in = in_chans * pH * pW
    v = jax.random.normal(k1, (embed_dim, in_chans, pH, pW), jnp.float32)
    v = v * (fan_in ** -0.5)
    g = 1.0 + 0.01 * jax.random.normal(k2, (embed_dim,), jnp.float32)
    bias = 0.02 * jax.random.normal(k3, (embed_dim,), jnp.float32)
    alpha = jnp.array([0.05], jnp.float32)  # learned activation scale (init)
    return {"proj_v": v, "proj_g": g, "proj_bias": bias, "act_alpha": alpha}


# ----------------------------------------------------------------------------
# Plain-JAX reference (same fake-quant math, lax conv, f32) for self-check.
# ----------------------------------------------------------------------------
def _reference(x, params, patch_size, nbits_act=8, nbits_w=8):
    pH, pW = patch_size
    B = x.shape[0]
    E = params["proj_v"].shape[0]
    alpha = params["act_alpha"].reshape(()).astype(jnp.float32)
    qp_a = 2.0 ** (nbits_act - 1) - 1.0
    xq = jnp.round(jnp.clip(x * (1.0 / alpha), -qp_a - 1.0, qp_a)) * alpha
    v = params["proj_v"].reshape(E, -1)
    v_norm = jnp.sqrt(jnp.sum(v * v, axis=1, keepdims=True))
    w = (params["proj_g"][:, None] / v_norm) * v
    qp_w = 2.0 ** (nbits_w - 1) - 1.0
    ws = jnp.maximum(jnp.max(jnp.abs(w)) / qp_w, 1e-12)
    wq = (jnp.round(jnp.clip(w / ws, -qp_w - 1.0, qp_w)) * ws).reshape(
        E, -1, pH, pW)
    ref = lax.conv_general_dilated(
        xq, wq, window_strides=(pH, pW), padding="VALID",
        dimension_numbers=("NCHW", "OIHW", "NCHW"),
        precision=lax.Precision.HIGHEST)
    ref = ref + params["proj_bias"][None, :, None, None]
    return ref.reshape(B, E, -1).transpose(0, 2, 1)


if __name__ == "__main__":
    configs = [
        # Small base config (M = 8 rows, single grid step).
        dict(img_size=(16, 16), patch_size=(8, 8), in_chans=4, embed_dim=32, B=2),
        # M = B*num_patches = 12 (not tile-aligned): exercises row padding;
        # embed_dim=32 exercises lane padding of the output to 128.
        dict(img_size=(24, 16), patch_size=(8, 8), in_chans=4, embed_dim=32, B=2),
        # M = 64 -> 2 grid steps (exercises the multi-step / v7x path);
        # K = 3*8*8 = 192 (not a multiple of 128) via full-extent K block.
        dict(img_size=(32, 32), patch_size=(8, 8), in_chans=3, embed_dim=64, B=4),
    ]

    key = jax.random.PRNGKey(0)
    for cfg in configs:
        key, kx, kp = jax.random.split(key, 3)
        img_size, patch_size = cfg["img_size"], cfg["patch_size"]
        x = jax.random.normal(
            kx, (cfg["B"], cfg["in_chans"], *img_size), jnp.float32)
        params = init_patch_embed_params(
            kp, in_chans=cfg["in_chans"], embed_dim=cfg["embed_dim"],
            patch_size=patch_size)

        fwd = functools.partial(
            patch_embed_forward, img_size=img_size, patch_size=patch_size)
        tokens, bitops = fwd(x, params)
        tokens = jax.block_until_ready(tokens)

        ref = _reference(x, params, patch_size)
        num_patches = (img_size[0] // patch_size[0]) * (img_size[1] // patch_size[1])
        assert tokens.shape == (cfg["B"], num_patches, cfg["embed_dim"]), tokens.shape
        assert tokens.dtype == jnp.bfloat16, tokens.dtype
        # bf16 output rounding dominates the error budget (values are O(1)).
        err = float(jnp.max(jnp.abs(tokens.astype(jnp.float32) - ref)))
        assert err < 5e-2, err

    print("KERNEL_OK")
</pallas_src>

<mosaic_0001>
module attributes {stable_mosaic.version = 11 : i64} {
  func.func @_patch_embed_kernel(%arg0: i32, %arg1: memref<1xf32, #tpu.memory_space<smem>>, %arg2: memref<32x256xi8, #tpu.memory_space<vmem>>, %arg3: memref<256x128xbf16, #tpu.memory_space<vmem>>, %arg4: memref<1x128xf32, #tpu.memory_space<vmem>>, %arg5: memref<32x128xbf16, #tpu.memory_space<vmem>>) attributes {dimension_semantics = [#tpu.dimension_semantics<parallel>], iteration_bounds = array<i64: 1>, scalar_prefetch = 0 : i64, scratch_operands = 0 : i64, tpu.core_type = #tpu.core_type<tc>, window_params = [{transform_indices = @transform_0, window_bounds = array<i64: 1>}, {transform_indices = @transform_1, window_bounds = array<i64: 32, 256>}, {pipeline_mode = #tpu.pipeline_mode<synchronous>, transform_indices = @transform_2, window_bounds = array<i64: 256, 128>}, {pipeline_mode = #tpu.pipeline_mode<synchronous>, transform_indices = @transform_3, window_bounds = array<i64: 1, 128>}, {transform_indices = @transform_4, window_bounds = array<i64: 32, 128>}]} {
    %c0 = arith.constant 0 : index
    %c0_0 = arith.constant 0 : index
    %0 = vector.load %arg2[%c0, %c0_0] : memref<32x256xi8, #tpu.memory_space<vmem>>, vector<32x256xi8>
    %1 = arith.sitofp %0 : vector<32x256xi8> to vector<32x256xf32>
    %2 = arith.truncf %1 : vector<32x256xf32> to vector<32x256xbf16>
    %c0_1 = arith.constant 0 : index
    %c0_2 = arith.constant 0 : index
    %3 = vector.load %arg3[%c0_1, %c0_2] : memref<256x128xbf16, #tpu.memory_space<vmem>>, vector<256x128xbf16>
    %cst = arith.constant dense<0.000000e+00> : vector<32x128xf32>
    %4 = tpu.matmul %2, %3, %cst {dimension_numbers = #tpu.dot_dimension_numbers<[1], [0], [0], [1], [0, 0, 1, 1], [], []>} : vector<32x256xbf16>, vector<256x128xbf16>, vector<32x128xf32> -> vector<32x128xf32>
    %c0_3 = arith.constant 0 : index
    %5 = memref.load %arg1[%c0_3] : memref<1xf32, #tpu.memory_space<smem>>
    %6 = vector.broadcast %5 : f32 to vector<32x128xf32>
    %7 = arith.mulf %4, %6 : vector<32x128xf32>
    %c0_4 = arith.constant 0 : index
    %c0_5 = arith.constant 0 : index
    %8 = vector.load %arg4[%c0_4, %c0_5] : memref<1x128xf32, #tpu.memory_space<vmem>>, vector<1x128xf32>
    %9 = vector.broadcast %8 : vector<1x128xf32> to vector<32x128xf32>
    %10 = arith.addf %7, %9 : vector<32x128xf32>
    %11 = arith.truncf %10 : vector<32x128xf32> to vector<32x128xbf16>
    %c0_6 = arith.constant 0 : index
    %c0_7 = arith.constant 0 : index
    %12 = vector.load %arg5[%c0_6, %c0_7] : memref<32x128xbf16, #tpu.memory_space<vmem>>, vector<32x128xbf16>
    tpu.vector_store %arg5[%c0_6, %c0_7], %11 {strides = array<i32>} : memref<32x128xbf16, #tpu.memory_space<vmem>>, vector<32x128xbf16>,
    return
  }
  func.func @transform_0(%arg0: i32) -> i32 {
    %c0_i32 = arith.constant 0 : i32
    %c0_i32_0 = arith.constant 0 : i32
    return %c0_i32 : i32
  }
  func.func @transform_1(%arg0: i32) -> (i32, i32) {
    %c0_i32 = arith.constant 0 : i32
    %c0_i32_0 = arith.constant 0 : i32
    return %arg0, %c0_i32 : i32, i32
  }
  func.func @transform_2(%arg0: i32) -> (i32, i32) {
    %c0_i32 = arith.constant 0 : i32
    %c0_i32_0 = arith.constant 0 : i32
    %c0_i32_1 = arith.constant 0 : i32
    return %c0_i32, %c0_i32_0 : i32, i32
  }
  func.func @transform_3(%arg0: i32) -> (i32, i32) {
    %c0_i32 = arith.constant 0 : i32
    %c0_i32_0 = arith.constant 0 : i32
    %c0_i32_1 = arith.constant 0 : i32
    return %c0_i32, %c0_i32_0 : i32, i32
  }
  func.func @transform_4(%arg0: i32) -> (i32, i32) {
    %c0_i32 = arith.constant 0 : i32
    %c0_i32_0 = arith.constant 0 : i32
    return %arg0, %c0_i32 : i32, i32
  }
}

</mosaic_0001>

<bundles_post_ra>
// kernel: tpu_custom_call.1
= control target key start
LH: loop header
LB: loop body
LE: loop exit
PB: predicated region body
PF: predicated region fallthrough
CT: control target
= control target key end

     0   :  { %10 = vsyncpa [#allocation4], 0  ;;  %s542_s0 = inlined_call_operand.<no memory space> [shape: f32[1], index: 0, kind: input, shape index: {}]   ;;  %s543_s1 = inlined_call_operand.hbm [shape: s8[32,256], index: 1, kind: input, shape index: {}]   ;;  %s544_s2 = inlined_call_operand.hbm [shape: bf16[256,128], index: 2, kind: input, shape index: {}]   ;;  %s545_s3 = inlined_call_operand.vmem [shape: f32[1,128], index: 3, kind: input, shape index: {}]   ;;  %s546_s4 = inlined_call_operand.hbm [shape: bf16[32,128], index: 4, kind: output, shape index: {}]  }
   0x1   :  { %11 = vsyncpa [#allocation7], 0 }
   0x2   :  { %12 = vsyncpa [#allocation5], 0  ;;  %s457_s15 = smov [#allocation3]   ;;  %s458_s17 = smov [#allocation6]  }
   0x3   :  { %s21_s16 = sshll.u32 %s457_s15, 4  ;;  %s30_s18 = sshll.u32 %s458_s17, 4  ;;  %s22_s16 = int_to_ptr.vmem [resolvable:$true] %s21_s16  ;;  %s487_s18 = int_to_ptr.vmem [resolvable:$true] %s30_s18 }
   0x4   :  { %s385_s21 = scalar_lea.hbm %s543_s1, 256 }
   0x5   :  { %p386_p0 = scmp.ne.s32.totalorder %s543_s1, %s385_s21  ;;  %p389_p1 = scmp.lt.u32.totalorder %s385_s21, %s543_s1 }
   0x7   :  { %p391_p2 = pnand %p389_p1, %p386_p0 }
   0x9   :  { %394 = shalt.err (!%p391_p2)
}
   0xa   :  { %s395_s26 = scalar_lea.vmem %s22_s16, 256  ;;  %p400_p4 = scmp.lt.s32.totalorder %s22_s16, %s22_s16 }
   0xb   :  { %p396_p3 = scmp.ne.s32.totalorder %s22_s16, %s395_s26  ;;  %p401_p5 = scmp.lt.s32.totalorder %s395_s26, %s395_s26 }
   0xd   :  { %p402_p6 = por %p401_p5, %p400_p4 }
   0xf   :  { %p403_p7 = pnand %p402_p6, %p396_p3 }
  0x11   :  { %406 = shalt.err (!%p403_p7)
}
  0x12   :  { %24 = dma.hbm_to_vmem [thread:$0]  %s543_s1, 256, %s22_s16, [#allocation4]  }
  0x13   :  { %s407_s5 = scalar_lea.hbm %s544_s2, 2048 }
  0x14   :  { %p408_p8 = scmp.ne.s32.totalorder %s544_s2, %s407_s5  ;;  %p411_p9 = scmp.lt.u32.totalorder %s407_s5, %s544_s2 }
  0x16   :  { %p413_p10 = pnand %p411_p9, %p408_p8 }
  0x18   :  { %416 = shalt.err (!%p413_p10)
}
  0x19   :  { %s417_s10 = scalar_lea.vmem %s487_s18, 2048  ;;  %p422_p12 = scmp.lt.s32.totalorder %s487_s18, %s487_s18 }
  0x1a   :  { %p418_p11 = scmp.ne.s32.totalorder %s487_s18, %s417_s10  ;;  %p423_p13 = scmp.lt.s32.totalorder %s417_s10, %s417_s10 }
  0x1c   :  { %p424_p0 = por %p423_p13, %p422_p12 }
  0x1e   :  { %p425_p1 = pnand %p424_p0, %p418_p11 }
  0x20   :  { %428 = shalt.err (!%p425_p1)
}
  0x21   :  { %s459_s1 = smov 64   ;;  %s460_s11 = smov 4  }
  0x22   :  { %36 = dma.hbm_to_vmem [thread:$0]  %s544_s2, 2048, %s487_s18, [#allocation7], %s459_s1, %s459_s1, %s460_s11  }
  0x23   :  { %451 = dma.done.wait [#allocation4], 256  }
  0x24   :  { %452 = vsyncadd [#allocation4], 4294967040 }
  0x25   :  { %453 = dma.done.wait [#allocation7], 2048  }
  0x26   :  { %454 = vsyncadd [#allocation7], 4294965248  ;;  %v369_v0 = vld [vmem:[#allocation6 + $0x40] sm:$0xff]   ;;  %v371_v2 = vld [vmem:[#allocation6 + $0x48] sm:$0xff]   ;;  %v230_v25 = vstv %s542_s0  ;;  %s461_s17 = smov [#allocation8]  }
  0x27   :  { %v370_v1 = vld [vmem:[#allocation6] sm:$0xff]   ;;  %320 = vmatprep.subr.bf16.mxu0 %v369_v0  ;;  %348 = vmatprep.subr.bf16.mxu1 %v369_v0  ;;  %v372_v3 = vld [vmem:[#allocation6 + $0x8] sm:$0xff]   ;;  %v373_v4 = vld [vmem:[#allocation6 + $0x50] sm:$0xff]   ;;  %s271_s18 = sshll.u32 %s461_s17, 4  ;;  %s272_s18 = int_to_ptr.vmem [resolvable:$true] %s271_s18 }
  0x28   :  { %321 = vmatpush3.bf16.msra.mxu0 %v370_v1  ;;  %356 = vmatpush3.bf16.msra.mxu1 %v370_v1  ;;  %v374_v5 = vld [vmem:[#allocation6 + $0x10] sm:$0xff]   ;;  %v375_v6 = vld [vmem:[#allocation6 + $0x58] sm:$0xff]   ;;  %v377_v8 = vld [vmem:[#allocation6 + $0x60] sm:$0xff]   ;;  %s429_s0 = scalar_lea.vmem %s272_s18, 256  ;;  %p434_p3 = scmp.lt.s32.totalorder %s272_s18, %s272_s18 }
  0x29   :  { %322 = vmatprep.subr.bf16.mxu0 %v371_v2  ;;  %349 = vmatprep.subr.bf16.mxu1 %v371_v2  ;;  %v376_v7 = vld [vmem:[#allocation6 + $0x18] sm:$0xff]   ;;  %v378_v9 = vld [vmem:[#allocation6 + $0x20] sm:$0xff]   ;;  %v379_v10 = vld [vmem:[#allocation6 + $0x68] sm:$0xff]   ;;  %p430_p2 = scmp.ne.s32.totalorder %s272_s18, %s429_s0  ;;  %p435_p4 = scmp.lt.s32.totalorder %s429_s0, %s429_s0 }
  0x2a   :  { %v47_v11 = vld [vmem:[#allocation3 + $0x8] sm:$0xff]  ;;  %v380_v14 = vld [vmem:[#allocation6 + $0x28] sm:$0xff]   ;;  %v381_v15 = vld [vmem:[#allocation6 + $0x70] sm:$0xff]  }
  0x2b   :  { %v49_v12 = vunpack.c.l.s8.bf16 %v47_v11  ;;  %v51_v13 = vunpack.c.h.s8.bf16 %v47_v11  ;;  %v382_v16 = vld [vmem:[#allocation6 + $0x30] sm:$0xff]   ;;  %v383_v17 = vld [vmem:[#allocation6 + $0x78] sm:$0xff]   ;;  %p436_p5 = por %p435_p4, %p434_p3 }
  0x2c   :  { %323 = vmatpush3.bf16.msra.mxu0 %v372_v3  ;;  %357 = vmatpush3.bf16.msra.mxu1 %v372_v3  ;;  %v384_v18 = vld [vmem:[#allocation6 + $0x38] sm:$0xff]   ;;  %v46_v19 = vld [vmem:[#allocation3] sm:$0xff] }
  0x2d   :  { %324 = vmatprep.subr.bf16.mxu0 %v373_v4  ;;  %350 = vmatprep.subr.bf16.mxu1 %v373_v4  ;;  %v48_v20 = vunpack.c.l.s8.bf16 %v46_v19  ;;  %v50_v21 = vunpack.c.h.s8.bf16 %v46_v19  ;;  %v300_v37 = vld [vmem:[%s545_s3] ss:$0 sm:$0xff]  ;;  %p437_p6 = pnand %p436_p5, %p430_p2 }
  0x2e   :  { %212 = vmatprep.mubr.bf16.mxu0 %v49_v12  ;;  %220 = vmatprep.mubr.bf16.mxu1 %v51_v13 }
  0x30   :  { %325 = vmatpush3.bf16.msra.mxu0 %v374_v5  ;;  %358 = vmatpush3.bf16.msra.mxu1 %v374_v5 }
  0x31   :  { %326 = vmatprep.subr.bf16.mxu0 %v375_v6  ;;  %351 = vmatprep.subr.bf16.mxu1 %v375_v6 }
  0x34   :  { %327 = vmatpush3.bf16.msra.mxu0 %v376_v7  ;;  %359 = vmatpush3.bf16.msra.mxu1 %v376_v7 }
  0x35   :  { %328 = vmatprep.subr.bf16.mxu0 %v377_v8  ;;  %352 = vmatprep.subr.bf16.mxu1 %v377_v8 }
  0x38   :  { %329 = vmatpush3.bf16.msra.mxu0 %v378_v9  ;;  %360 = vmatpush3.bf16.msra.mxu1 %v378_v9 }
  0x39   :  { %330 = vmatprep.subr.bf16.mxu0 %v379_v10  ;;  %353 = vmatprep.subr.bf16.mxu1 %v379_v10 }
  0x3c   :  { %331 = vmatpush3.bf16.msra.mxu0 %v380_v14  ;;  %361 = vmatpush3.bf16.msra.mxu1 %v380_v14 }
  0x3d   :  { %332 = vmatprep.subr.bf16.mxu0 %v381_v15  ;;  %354 = vmatprep.subr.bf16.mxu1 %v381_v15 }
  0x40   :  { %333 = vmatpush3.bf16.msra.mxu0 %v382_v16  ;;  %362 = vmatpush3.bf16.msra.mxu1 %v382_v16 }
  0x41   :  { %334 = vmatprep.subr.bf16.mxu0 %v383_v17  ;;  %355 = vmatprep.subr.bf16.mxu1 %v383_v17 }
  0x44   :  { %335 = vmatpush3.bf16.msra.mxu0 %v384_v18  ;;  %363 = vmatpush3.bf16.msra.mxu1 %v384_v18 }
  0x47   :  { %213 = vmatmul.mubr.bf16.vlgmr.msra.gmra.mrb[0].mxu0 %v48_v20  ;;  %221 = vmatmul.mubr.bf16.vlgmr.msra.gmra.mrb[0].mxu1 %v50_v21 }
 0x11a   :  { %v336_v22 = vpop.f32.mrb[0].mxu0  ;;  %v342_v23 = vpop.f32.mrb[0].mxu1 }
 0x11b   :  { %v337_v24 = vpop.f32.mrb[1].mxu0  ;;  %v343_v26 = vpop.f32.mrb[1].mxu1 }
 0x11c   :  { %v338_v27 = vadd.f32 %v337_v24, %v336_v22  ;;  %v344_v28 = vadd.f32 %v343_v26, %v342_v23  ;;  %v339_v29 = vpop.f32.mrb[2].mxu0  ;;  %v345_v30 = vpop.f32.mrb[2].mxu1 }
 0x11d   :  { %v340_v31 = vpop.f32.mrb[3].mxu0  ;;  %v346_v32 = vpop.f32.mrb[3].mxu1 }
 0x11e   :  { %v231_v33 = vmul.f32 %v338_v27, %v230_v25  ;;  %v233_v34 = vmul.f32 %v344_v28, %v230_v25  ;;  %v341_v35 = vadd.f32 %v340_v31, %v339_v29  ;;  %v347_v36 = vadd.f32 %v346_v32, %v345_v30 }
 0x120   :  { %v232_v38 = vmul.f32 %v341_v35, %v230_v25  ;;  %v234_v39 = vmul.f32 %v347_v36, %v230_v25  ;;  %v242_v40 = vadd.f32 %v300_v37, %v231_v33  ;;  %v244_v41 = vadd.f32 %v300_v37, %v233_v34 }
 0x122   :  { %v243_v42 = vadd.f32 %v300_v37, %v232_v38  ;;  %v245_v43 = vadd.f32 %v300_v37, %v234_v39 }
 0x124   :  { %v312_v44 = vpack.c.bf16 %v243_v42, %v242_v40  ;;  %v317_v45 = vpack.c.bf16 %v245_v43, %v244_v41 }
 0x126   :  { %313 = vst [vmem:[#allocation8] sm:$0xff] %v312_v44   ;;  %319 = vst [vmem:[#allocation8 + $0x8] sm:$0xff] %v317_v45  }
 0x127   :  { %440 = shalt.err (!%p437_p6)
}
 0x128   :  { %s441_s20 = scalar_lea.hbm %s546_s4, 256 }
 0x129   :  { %p442_p7 = scmp.ne.s32.totalorder %s546_s4, %s441_s20  ;;  %p445_p8 = scmp.lt.u32.totalorder %s441_s20, %s546_s4 }
 0x12b   :  { %p447_p9 = pnand %p445_p8, %p442_p7 }
 0x12d   :  { %450 = shalt.err (!%p447_p9)
}
 0x12e   :  { %277 = dma.vmem_to_hbm [thread:$0]  %s272_s18, 256, %s546_s4, [#allocation5], %s459_s1, %s459_s1, %s460_s11  }
 0x12f   :  { %455 = dma.done.wait [#allocation5], 256  }
 0x130   :  { %456 = vsyncadd [#allocation5], 4294967040 }
 0x131   :  { %281 = vsyncpa [#allocation4], 1 }
 0x132   :  { %282 = vsyncpa [#allocation7], 1 }
 0x133   :  { %283 = vsyncpa [#allocation5], 1 }

</bundles_post_ra>
